<compile_context>
chip_gen: v5e
topology: v5e:2x2
jax: 0.10.0
libtpu: 0.0.40
codegen_flags: <defaults>
</compile_context>

<pallas_src>
import functools

import numpy as np

import jax
import jax.numpy as jnp
from jax.experimental import pallas as pl
from jax.experimental.pallas import tpu as pltpu


def _partial_kernel(x_ref, w_ref, m_ref, o_ref, slab_ref, *,
                    B_blk, idx, dim, HW, W, K, p):
    """Fused Partial.forward for a block of B_blk batch elements.

    x_ref:    (B_blk, dim, HW)   input, channels on sublanes, H*W on lanes
    w_ref:    (idx, K*K*idx)     conv weight, w_ref[co, (dy*K+dx)*idx + ci]
    m_ref:    (K*K, HW)          per-tap validity masks (1.0 inside, 0.0 halo)
    o_ref:    (B_blk, dim, HW)   output: conv in rows [0:idx], rest copied
    slab_ref: (K*K*idx, HW) f32  scratch holding the rolled+masked taps
    """
    if idx > 0:
        w = w_ref[...].astype(jnp.float32)            # hoisted out of the b loop
        for b in range(B_blk):                        # static unroll
            x1 = x_ref[b, :idx, :].astype(jnp.float32)          # (idx, HW)
            for dy in range(K):
                for dx in range(K):
                    t = dy * K + dx
                    off = (dy - p) * W + (dx - p)
                    if off == 0:
                        xs = x1
                    else:
                        # shifted so xs[:, j] == x1[:, j + off] (circular wrap),
                        xs = pltpu.roll(x1, shift=(-off) % HW, axis=1)
                    # ... wrapped / out-of-image taps zeroed (center tap is all
                    # ones -> skip the multiply).
                    if not (dy == p and dx == p):
                        xs = xs * m_ref[t:t + 1, :]
                    slab_ref[t * idx:(t + 1) * idx, :] = xs
            # Single MXU contraction replaces the old VPU broadcast-FMA loop.
            acc = jnp.dot(w, slab_ref[...],
                          preferred_element_type=jnp.float32)   # (idx, HW)
            o_ref[b, :idx, :] = acc.astype(o_ref.dtype)
    if idx < dim:
        for b in range(B_blk):
            # Pass-through channels: fused copy (replaces the torch.cat glue).
            o_ref[b, idx:, :] = x_ref[b, idx:, :]


def _build_masks(H, W, K, p):
    """Static (K*K, H*W) masks: 1.0 where the shifted tap lands inside the image."""
    masks = np.zeros((K * K, H * W), dtype=np.float32)
    hh = np.arange(H)[:, None]
    ww = np.arange(W)[None, :]
    for dy in range(K):
        for dx in range(K):
            dyo, dxo = dy - p, dx - p
            valid = ((hh + dyo >= 0) & (hh + dyo < H) &
                     (ww + dxo >= 0) & (ww + dxo < W))
            masks[dy * K + dx] = valid.astype(np.float32).reshape(-1)
    return jnp.asarray(masks)


def _choose_batch_block(N, dim, HW, itemsize):
    """Largest batch block that divides N, fits a modest VMEM budget, and keeps
    the grid >= 2 steps (so both v7x TensorCores get work)."""
    per_img_bytes = dim * HW * itemsize
    budget = 2 * 1024 * 1024          # per-step input block (double-buffered in+out)
    best = 1
    for b in range(1, N + 1):
        if N % b != 0:
            continue
        if N >= 2 and (N // b) < 2:
            continue
        if b * per_img_bytes > budget:
            continue
        best = max(best, b)
    return best


def partial_forward(x_nchw, weight_oihw, *, dim, kernel_size):
    """Full `Partial.forward` (NCHW in / NCHW out), matching PyTorch semantics."""
    N, C, H, W = x_nchw.shape
    assert C == dim
    K = kernel_size
    # padding = K//2 only preserves HxW for odd K (matches PyTorch semantics).
    assert K % 2 == 1, "Partial kernel requires odd kernel_size"
    idx = int(dim * 0.25)
    p = K // 2
    HW = H * W

    if idx == 0:
        return x_nchw  # nothing to convolve

    # Free reshape (merges contiguous minor dims): (N, C, H, W) -> (N, C, HW)
    x_flat = x_nchw.reshape(N, dim, HW)
    # (O, I, Kh, Kw) -> (O, Kh, Kw, I) -> (O, Kh*Kw*I); tiny.
    w2 = jnp.transpose(weight_oihw, (0, 2, 3, 1)).reshape(idx, K * K * idx)
    masks = _build_masks(H, W, K, p)

    B_blk = _choose_batch_block(N, dim, HW, x_nchw.dtype.itemsize)

    kernel = functools.partial(
        _partial_kernel, B_blk=B_blk, idx=idx, dim=dim, HW=HW, W=W, K=K, p=p
    )

    out_flat = pl.pallas_call(
        kernel,
        out_shape=jax.ShapeDtypeStruct((N, dim, HW), x_nchw.dtype),
        grid_spec=pltpu.PrefetchScalarGridSpec(
            num_scalar_prefetch=0,
            grid=(N // B_blk,),
            in_specs=[
                # B_blk full images per grid step: (B_blk, dim, HW) block
                pl.BlockSpec((B_blk, dim, HW), lambda b: (b, 0, 0)),
                # conv weight, resident across all grid steps
                pl.BlockSpec((idx, K * K * idx), lambda b: (0, 0)),
                # halo masks, resident across all grid steps
                pl.BlockSpec((K * K, HW), lambda b: (0, 0)),
            ],
            out_specs=pl.BlockSpec((B_blk, dim, HW), lambda b: (b, 0, 0)),
            scratch_shapes=[pltpu.VMEM((K * K * idx, HW), jnp.float32)],
        ),
        compiler_params=pltpu.CompilerParams(
            dimension_semantics=("parallel",),
        ),
    )(x_flat, w2, masks)

    return out_flat.reshape(N, dim, H, W)


if __name__ == "__main__":
    # Small shapes consistent with the module: dim=16 -> idx=4, k=3.
    N, dim, H, W = 2, 16, 16, 16
    kernel_size = 3
    idx = int(dim * 0.25)

    key = jax.random.PRNGKey(0)
    kx, kw = jax.random.split(key)
    x = jax.random.normal(kx, (N, dim, H, W), dtype=jnp.float32)
    # Deterministic synthetic weight, OIHW like nn.Conv2d.weight (no bias).
    weight = (
        jax.random.normal(kw, (idx, idx, kernel_size, kernel_size),
                          dtype=jnp.float32) * 0.1
    )

    fwd = jax.jit(functools.partial(partial_forward, dim=dim,
                                    kernel_size=kernel_size))
    out = jax.block_until_ready(fwd(x, weight))
    assert out.shape == (N, dim, H, W), out.shape

    # Cross-check against XLA's conv + concat (reference semantics).
    ref_conv = jax.lax.conv_general_dilated(
        x[:, :idx], weight,
        window_strides=(1, 1),
        padding=[(kernel_size // 2, kernel_size // 2)] * 2,
        dimension_numbers=("NCHW", "OIHW", "NCHW"),
    )
    ref = jnp.concatenate([ref_conv, x[:, idx:]], axis=1)
    assert jnp.allclose(out, ref, atol=1e-4, rtol=1e-4), float(
        jnp.max(jnp.abs(out - ref)))

    print("KERNEL_OK")
</pallas_src>

<mosaic_0001>
module attributes {stable_mosaic.version = 11 : i64} {
  func.func @_partial_kernel(%arg0: i32, %arg1: memref<1x16x256xf32, #tpu.memory_space<vmem>>, %arg2: memref<4x36xf32, #tpu.memory_space<vmem>>, %arg3: memref<9x256xf32, #tpu.memory_space<vmem>>, %arg4: memref<1x16x256xf32, #tpu.memory_space<vmem>>, %arg5: memref<36x256xf32, #tpu.memory_space<vmem>>) attributes {dimension_semantics = [#tpu.dimension_semantics<parallel>], iteration_bounds = array<i64: 2>, scalar_prefetch = 0 : i64, scratch_operands = 1 : i64, tpu.core_type = #tpu.core_type<tc>, window_params = [{transform_indices = @transform_0, window_bounds = array<i64: 1, 16, 256>}, {pipeline_mode = #tpu.pipeline_mode<synchronous>, transform_indices = @transform_1, window_bounds = array<i64: 4, 36>}, {pipeline_mode = #tpu.pipeline_mode<synchronous>, transform_indices = @transform_2, window_bounds = array<i64: 9, 256>}, {transform_indices = @transform_3, window_bounds = array<i64: 1, 16, 256>}]} {
    %c0 = arith.constant 0 : index
    %c0_0 = arith.constant 0 : index
    %0 = vector.load %arg2[%c0, %c0_0] : memref<4x36xf32, #tpu.memory_space<vmem>>, vector<4x36xf32>
    %c0_1 = arith.constant 0 : index
    %c0_2 = arith.constant 0 : index
    %c0_3 = arith.constant 0 : index
    %1 = vector.load %arg1[%c0_1, %c0_2, %c0_3] : memref<1x16x256xf32, #tpu.memory_space<vmem>>, vector<1x4x256xf32>
    %2 = vector.shape_cast %1 : vector<1x4x256xf32> to vector<4x256xf32>
    %c17_i32 = arith.constant 17 : i32
    %3 = tpu.dynamic_rotate %2 by %c17_i32 dim 1 : vector<4x256xf32>, i32 -> vector<4x256xf32>
    %c0_4 = arith.constant 0 : index
    %c0_5 = arith.constant 0 : index
    %4 = vector.load %arg3[%c0_4, %c0_5] : memref<9x256xf32, #tpu.memory_space<vmem>>, vector<1x256xf32>
    %5 = vector.broadcast %4 : vector<1x256xf32> to vector<4x256xf32>
    %6 = arith.mulf %3, %5 : vector<4x256xf32>
    %c0_6 = arith.constant 0 : index
    %c0_7 = arith.constant 0 : index
    %7 = vector.load %arg5[%c0_6, %c0_7] : memref<36x256xf32, #tpu.memory_space<vmem>>, vector<4x256xf32>
    tpu.vector_store %arg5[%c0_6, %c0_7], %6 {strides = array<i32>} : memref<36x256xf32, #tpu.memory_space<vmem>>, vector<4x256xf32>,
    %c16_i32 = arith.constant 16 : i32
    %8 = tpu.dynamic_rotate %2 by %c16_i32 dim 1 : vector<4x256xf32>, i32 -> vector<4x256xf32>
    %c1 = arith.constant 1 : index
    %c0_8 = arith.constant 0 : index
    %9 = vector.load %arg3[%c1, %c0_8] : memref<9x256xf32, #tpu.memory_space<vmem>>, vector<1x256xf32>
    %10 = vector.broadcast %9 : vector<1x256xf32> to vector<4x256xf32>
    %11 = arith.mulf %8, %10 : vector<4x256xf32>
    %c4 = arith.constant 4 : index
    %c0_9 = arith.constant 0 : index
    %12 = vector.load %arg5[%c4, %c0_9] : memref<36x256xf32, #tpu.memory_space<vmem>>, vector<4x256xf32>
    tpu.vector_store %arg5[%c4, %c0_9], %11 {strides = array<i32>} : memref<36x256xf32, #tpu.memory_space<vmem>>, vector<4x256xf32>,
    %c15_i32 = arith.constant 15 : i32
    %13 = tpu.dynamic_rotate %2 by %c15_i32 dim 1 : vector<4x256xf32>, i32 -> vector<4x256xf32>
    %c2 = arith.constant 2 : index
    %c0_10 = arith.constant 0 : index
    %14 = vector.load %arg3[%c2, %c0_10] : memref<9x256xf32, #tpu.memory_space<vmem>>, vector<1x256xf32>
    %15 = vector.broadcast %14 : vector<1x256xf32> to vector<4x256xf32>
    %16 = arith.mulf %13, %15 : vector<4x256xf32>
    %c8 = arith.constant 8 : index
    %c0_11 = arith.constant 0 : index
    %17 = vector.load %arg5[%c8, %c0_11] : memref<36x256xf32, #tpu.memory_space<vmem>>, vector<4x256xf32>
    tpu.vector_store %arg5[%c8, %c0_11], %16 {strides = array<i32>} : memref<36x256xf32, #tpu.memory_space<vmem>>, vector<4x256xf32>,
    %c1_i32 = arith.constant 1 : i32
    %18 = tpu.dynamic_rotate %2 by %c1_i32 dim 1 : vector<4x256xf32>, i32 -> vector<4x256xf32>
    %c3 = arith.constant 3 : index
    %c0_12 = arith.constant 0 : index
    %19 = vector.load %arg3[%c3, %c0_12] : memref<9x256xf32, #tpu.memory_space<vmem>>, vector<1x256xf32>
    %20 = vector.broadcast %19 : vector<1x256xf32> to vector<4x256xf32>
    %21 = arith.mulf %18, %20 : vector<4x256xf32>
    %c12 = arith.constant 12 : index
    %c0_13 = arith.constant 0 : index
    %22 = vector.load %arg5[%c12, %c0_13] : memref<36x256xf32, #tpu.memory_space<vmem>>, vector<4x256xf32>
    tpu.vector_store %arg5[%c12, %c0_13], %21 {strides = array<i32>} : memref<36x256xf32, #tpu.memory_space<vmem>>, vector<4x256xf32>,
    %c16 = arith.constant 16 : index
    %c0_14 = arith.constant 0 : index
    %23 = vector.load %arg5[%c16, %c0_14] : memref<36x256xf32, #tpu.memory_space<vmem>>, vector<4x256xf32>
    tpu.vector_store %arg5[%c16, %c0_14], %2 {strides = array<i32>} : memref<36x256xf32, #tpu.memory_space<vmem>>, vector<4x256xf32>,
    %c255_i32 = arith.constant 255 : i32
    %24 = tpu.dynamic_rotate %2 by %c255_i32 dim 1 : vector<4x256xf32>, i32 -> vector<4x256xf32>
    %c5 = arith.constant 5 : index
    %c0_15 = arith.constant 0 : index
    %25 = vector.load %arg3[%c5, %c0_15] : memref<9x256xf32, #tpu.memory_space<vmem>>, vector<1x256xf32>
    %26 = vector.broadcast %25 : vector<1x256xf32> to vector<4x256xf32>
    %27 = arith.mulf %24, %26 : vector<4x256xf32>
    %c20 = arith.constant 20 : index
    %c0_16 = arith.constant 0 : index
    %28 = vector.load %arg5[%c20, %c0_16] : memref<36x256xf32, #tpu.memory_space<vmem>>, vector<4x256xf32>
    tpu.vector_store %arg5[%c20, %c0_16], %27 {strides = array<i32>} : memref<36x256xf32, #tpu.memory_space<vmem>>, vector<4x256xf32>,
    %c241_i32 = arith.constant 241 : i32
    %29 = tpu.dynamic_rotate %2 by %c241_i32 dim 1 : vector<4x256xf32>, i32 -> vector<4x256xf32>
    %c6 = arith.constant 6 : index
    %c0_17 = arith.constant 0 : index
    %30 = vector.load %arg3[%c6, %c0_17] : memref<9x256xf32, #tpu.memory_space<vmem>>, vector<1x256xf32>
    %31 = vector.broadcast %30 : vector<1x256xf32> to vector<4x256xf32>
    %32 = arith.mulf %29, %31 : vector<4x256xf32>
    %c24 = arith.constant 24 : index
    %c0_18 = arith.constant 0 : index
    %33 = vector.load %arg5[%c24, %c0_18] : memref<36x256xf32, #tpu.memory_space<vmem>>, vector<4x256xf32>
    tpu.vector_store %arg5[%c24, %c0_18], %32 {strides = array<i32>} : memref<36x256xf32, #tpu.memory_space<vmem>>, vector<4x256xf32>,
    %c240_i32 = arith.constant 240 : i32
    %34 = tpu.dynamic_rotate %2 by %c240_i32 dim 1 : vector<4x256xf32>, i32 -> vector<4x256xf32>
    %c7 = arith.constant 7 : index
    %c0_19 = arith.constant 0 : index
    %35 = vector.load %arg3[%c7, %c0_19] : memref<9x256xf32, #tpu.memory_space<vmem>>, vector<1x256xf32>
    %36 = vector.broadcast %35 : vector<1x256xf32> to vector<4x256xf32>
    %37 = arith.mulf %34, %36 : vector<4x256xf32>
    %c28 = arith.constant 28 : index
    %c0_20 = arith.constant 0 : index
    %38 = vector.load %arg5[%c28, %c0_20] : memref<36x256xf32, #tpu.memory_space<vmem>>, vector<4x256xf32>
    tpu.vector_store %arg5[%c28, %c0_20], %37 {strides = array<i32>} : memref<36x256xf32, #tpu.memory_space<vmem>>, vector<4x256xf32>,
    %c239_i32 = arith.constant 239 : i32
    %39 = tpu.dynamic_rotate %2 by %c239_i32 dim 1 : vector<4x256xf32>, i32 -> vector<4x256xf32>
    %c8_21 = arith.constant 8 : index
    %c0_22 = arith.constant 0 : index
    %40 = vector.load %arg3[%c8_21, %c0_22] : memref<9x256xf32, #tpu.memory_space<vmem>>, vector<1x256xf32>
    %41 = vector.broadcast %40 : vector<1x256xf32> to vector<4x256xf32>
    %42 = arith.mulf %39, %41 : vector<4x256xf32>
    %c32 = arith.constant 32 : index
    %c0_23 = arith.constant 0 : index
    %43 = vector.load %arg5[%c32, %c0_23] : memref<36x256xf32, #tpu.memory_space<vmem>>, vector<4x256xf32>
    tpu.vector_store %arg5[%c32, %c0_23], %42 {strides = array<i32>} : memref<36x256xf32, #tpu.memory_space<vmem>>, vector<4x256xf32>,
    %c0_24 = arith.constant 0 : index
    %c0_25 = arith.constant 0 : index
    %44 = vector.load %arg5[%c0_24, %c0_25] : memref<36x256xf32, #tpu.memory_space<vmem>>, vector<36x256xf32>
    %cst = arith.constant dense<0.000000e+00> : vector<4x256xf32>
    %45 = tpu.matmul %0, %44, %cst {dimension_numbers = #tpu.dot_dimension_numbers<[1], [0], [0], [1], [0, 0, 1, 1], [], []>} : vector<4x36xf32>, vector<36x256xf32>, vector<4x256xf32> -> vector<4x256xf32>
    %c0_26 = arith.constant 0 : index
    %c0_27 = arith.constant 0 : index
    %c0_28 = arith.constant 0 : index
    %46 = vector.load %arg4[%c0_26, %c0_27, %c0_28] : memref<1x16x256xf32, #tpu.memory_space<vmem>>, vector<1x4x256xf32>
    %47 = vector.shape_cast %46 : vector<1x4x256xf32> to vector<4x256xf32>
    %48 = vector.shape_cast %45 : vector<4x256xf32> to vector<1x4x256xf32>
    tpu.vector_store %arg4[%c0_26, %c0_27, %c0_28], %48 {strides = array<i32>} : memref<1x16x256xf32, #tpu.memory_space<vmem>>, vector<1x4x256xf32>,
    %c0_29 = arith.constant 0 : index
    %c4_30 = arith.constant 4 : index
    %c0_31 = arith.constant 0 : index
    %49 = vector.load %arg1[%c0_29, %c4_30, %c0_31] : memref<1x16x256xf32, #tpu.memory_space<vmem>>, vector<1x12x256xf32>
    %50 = vector.shape_cast %49 : vector<1x12x256xf32> to vector<12x256xf32>
    %c0_32 = arith.constant 0 : index
    %c4_33 = arith.constant 4 : index
    %c0_34 = arith.constant 0 : index
    %51 = vector.load %arg4[%c0_32, %c4_33, %c0_34] : memref<1x16x256xf32, #tpu.memory_space<vmem>>, vector<1x12x256xf32>
    %52 = vector.shape_cast %51 : vector<1x12x256xf32> to vector<12x256xf32>
    %53 = vector.shape_cast %50 : vector<12x256xf32> to vector<1x12x256xf32>
    tpu.vector_store %arg4[%c0_32, %c4_33, %c0_34], %53 {strides = array<i32>} : memref<1x16x256xf32, #tpu.memory_space<vmem>>, vector<1x12x256xf32>,
    return
  }
  func.func @transform_0(%arg0: i32) -> (i32, i32, i32) {
    %c0_i32 = arith.constant 0 : i32
    %c0_i32_0 = arith.constant 0 : i32
    %c0_i32_1 = arith.constant 0 : i32
    return %arg0, %c0_i32, %c0_i32_0 : i32, i32, i32
  }
  func.func @transform_1(%arg0: i32) -> (i32, i32) {
    %c0_i32 = arith.constant 0 : i32
    %c0_i32_0 = arith.constant 0 : i32
    %c0_i32_1 = arith.constant 0 : i32
    return %c0_i32, %c0_i32_0 : i32, i32
  }
  func.func @transform_2(%arg0: i32) -> (i32, i32) {
    %c0_i32 = arith.constant 0 : i32
    %c0_i32_0 = arith.constant 0 : i32
    %c0_i32_1 = arith.constant 0 : i32
    return %c0_i32, %c0_i32_0 : i32, i32
  }
  func.func @transform_3(%arg0: i32) -> (i32, i32, i32) {
    %c0_i32 = arith.constant 0 : i32
    %c0_i32_0 = arith.constant 0 : i32
    %c0_i32_1 = arith.constant 0 : i32
    return %arg0, %c0_i32, %c0_i32_0 : i32, i32, i32
  }
}

</mosaic_0001>

<bundles_post_ra>
// kernel: partial_forward.1
= control target key start
LH: loop header
LB: loop body
LE: loop exit
PB: predicated region body
PF: predicated region fallthrough
CT: control target
= control target key end

     0   :  { %s547_s12 = smov 0   ;;  %s616_s0 = inlined_call_operand.vmem [shape: f32[2,16,256], index: 0, kind: input, shape index: {}]   ;;  %s617_s1 = inlined_call_operand.vmem [shape: f32[4,36], index: 1, kind: input, shape index: {}]   ;;  %s618_s2 = inlined_call_operand.vmem [shape: f32[9,256], index: 2, kind: input, shape index: {}]   ;;  %s619_s3 = inlined_call_operand.vmem [shape: f32[2,16,256], index: 3, kind: output, shape index: {}]  }
   0x1 LB: > { %s471_s13 = sadd.s32 4294967295, %s517_s12   ;;  %p475_p0 = scmp.ge.s32.totalorder %s517_s12, 1  ;;  %s517_s12 = sphi %s547_s12, %s13_s12  }
   0x2   : > { %p137_p1 = scmp.lt.s32.totalorder %s517_s12, 3 }
   0x4   : > { %p138_p2 = pnand %p475_p0, %p137_p1 }
   0x5   : > { %p161_p3 = scmp.lt.s32.totalorder (!%p138_p2), %s471_s13, 1  ;;  %s519_s18 = smov (!%p138_p2), 111  }
   0x6   : > { %141 = sbr.rel (%p138_p2) target bundleno = 310 (0x136), region = 32  ;;  %s520_s19 = smov (!%p138_p2), 112  }
   0x7   : > { %s521_s20 = smov (!%p138_p2), 127   ;;  %s522_s21 = smov (!%p138_p2), 113  }
   0x8   : > { %s523_s22 = smov (!%p138_p2), 1   ;;  %s524_s23 = smov (!%p138_p2), 16  }
   0x9   : > { %s525_s24 = smov (!%p138_p2), 15   ;;  %s526_s25 = smov (!%p138_p2), 17  }
   0xb   : > { %s621_s13 = smov (!%p161_p3, %s471_s13), 1  ;;  %v178_v2 = vlaneseq  ;;  %v483_v5 = vld [vmem:[%s618_s2 + $0x5] ss:$8 sm:$0x3]  ;;  %vm359_vm4 = vcmask 1043456   ;;  %vm355_vm9 = vcmask 293888  }
   0xc   : > { %s493_s14 = sshll.u32 %s621_s13, 5  ;;  %v271_v6 = vperm.slane %v483_v5, 0  ;;  %v272_v7 = vperm.slane %v483_v5, 1  ;;  %v486_v17 = vld [vmem:[%s618_s2 + $0x10] ss:$8 sm:$0x3] }
   0xd   : > { %s563_s17 = scalar_lea.vmem %s616_s0, %s493_s14  ;;  %v567_v4 = vand.u32 127, %v178_v2  ;;  %v485_v18 = vld [vmem:[%s618_s2 + $0x7] ss:$8 sm:$0x3]  ;;  %v337_v19 = vperm.slane %v486_v17, 0  ;;  %v338_v20 = vperm.slane %v486_v17, 1 }
   0xe   : > { %v172_v0 = vld [vmem:[%s563_s17] sm:$0xf]  ;;  %v173_v1 = vld [vmem:[%s563_s17 + $0x8] sm:$0xf]  ;;  %v313_v21 = vperm.slane %v485_v18, 0  ;;  %v314_v22 = vperm.slane %v485_v18, 1 }
   0xf   : > { %327 = vrot.lane.b32.xlu1 %v172_v0, %s519_s18  ;;  %259 = vst [vmem:[#allocation2 + $0x48] sm:$0xf] %v172_v0  ;;  %303 = vrot.lane.b32.xlu0 %v172_v0, %s520_s19  ;;  %vm265_vm0 = vcmp.lt.s32.totalorder %v567_v4, 127  ;;  %vm331_vm1 = vcmp.lt.s32.totalorder %v567_v4, 111  ;;  %vm307_vm2 = vcmp.lt.s32.totalorder %v567_v4, 112  ;;  %vm289_vm3 = vcmp.lt.s32.totalorder %v567_v4, 113 }
  0x10   : > { %260 = vst [vmem:[#allocation2 + $0x28] sm:$0xf] %v173_v1  ;;  %261 = vrot.lane.b32.xlu2 %v172_v0, %s521_s20  ;;  %v484_v33 = vld [vmem:[%s618_s2 + $0x6] ss:$8 sm:$0x3]  ;;  %vm239_vm5 = vcmp.lt.s32.totalorder %v567_v4, 1 }
  0x11   : > { %v295_v37 = vperm.slane %v484_v33, 0  ;;  %v296_v38 = vperm.slane %v484_v33, 1  ;;  %v482_v45 = vld [vmem:[%s618_s2 + $0x3] ss:$8 sm:$0x3]  ;;  %vm197_vm6 = vcmp.lt.s32.totalorder %v567_v4, 16 }
  0x12   : > { %v480_v47 = vld [vmem:[%s618_s2 + $0x1] ss:$8 sm:$0x3]  ;;  %v245_v49 = vperm.slane %v482_v45, 0  ;;  %v246_v50 = vperm.slane %v482_v45, 1  ;;  %vm221_vm7 = vcmp.lt.s32.totalorder %v567_v4, 15 }
  0x13   : > { %v203_v51 = vperm.slane %v480_v47, 0  ;;  %v204_v52 = vperm.slane %v480_v47, 1  ;;  %v183_v18 = vld [vmem:[%s618_s2] ss:$8 sm:$0x3]  ;;  %vm180_vm8 = vcmp.lt.s32.totalorder %v567_v4, 17 }
  0x14   : > { %v171_v4 = vld [vmem:[%s617_s1] sm:$0xf]  ;;  %v410_v33 = vld [vmem:[%s563_s17 + $0x10] sm:$0xff] }
  0x17   : > { %329 = vrot.lane.b32.xlu1 %v173_v1, %s519_s18  ;;  %305 = vrot.lane.b32.xlu0 %v173_v1, %s520_s19 }
  0x18   : > { %263 = vrot.lane.b32.xlu2 %v173_v1, %s521_s20 }
  0x1f   : > { %287 = vrot.lane.b32.xlu1 %v173_v1, %s522_s21  ;;  %285 = vrot.lane.b32.xlu0 %v172_v0, %s522_s21 }
  0x20   : > { %235 = vrot.lane.b32.xlu2 %v172_v0, %s523_s22 }
  0x27   : > { %193 = vrot.lane.b32.xlu1 %v172_v0, %s524_s23  ;;  %237 = vrot.lane.b32.xlu0 %v173_v1, %s523_s22 }
  0x28   : > { %195 = vrot.lane.b32.xlu2 %v173_v1, %s524_s23  ;;  %s170_s23 = scalar_lea.vmem %s619_s3, %s493_s14 }
  0x29   : > { %414 = vst [vmem:[%s170_s23 + $0x10] sm:$0xff] %v410_v33 }
  0x2f   : > { %219 = vrot.lane.b32.xlu1 %v173_v1, %s525_s24  ;;  %217 = vrot.lane.b32.xlu0 %v172_v0, %s525_s24 }
  0x30   : > { %174 = vrot.lane.b32.xlu2 %v172_v0, %s526_s25 }
  0x37   : > { %176 = vrot.lane.b32.xlu0 %v173_v1, %s526_s25  ;;  %v481_v1 = vld [vmem:[%s618_s2 + $0x2] ss:$8 sm:$0x3] }
  0x6a   : > { %v262_v3 = vpop.permute.xlu2 %261 }
  0x72   : > { %v264_v8 = vpop.permute.xlu2 %263 }
  0x73   : > { %v266_v9 = vsel %vm265_vm0, %v262_v3, %v264_v8  ;;  %v267_v10 = vsel %vm265_vm0, %v264_v8, %v262_v3 }
  0x74   : > { %v275_v11 = vmul.f32 %v271_v6, %v266_v9  ;;  %v276_v12 = vmul.f32 %v272_v7, %v267_v10  ;;  %v227_v10 = vperm.slane %v481_v1, 0 }
  0x76   : > { %v279_v13 = vrot.slane %v275_v11, 4  ;;  %v280_v14 = vrot.slane %v276_v12, 4  ;;  %v228_v11 = vperm.slane %v481_v1, 1 }
  0x78   : > { %283 = vst [vmem:[#allocation2 + $0x48] sm:$0xf0] %v279_v13 }
  0x79   : > { %284 = vst [vmem:[#allocation2 + $0x28] sm:$0xf0] %v280_v14 }
  0x7a   : > { %v236_v36 = vpop.permute.xlu2 %235 }
  0x7f   : > { %v349_v8 = vld [vmem:[#allocation2 + $0x48] sm:$0xff] }
  0x80   : > { %v350_v9 = vld [vmem:[#allocation2 + $0x28] sm:$0xff] }
  0x81   : > { %v328_v15 = vpop.permute.xlu1 %327  ;;  %v304_v16 = vpop.permute.xlu0 %303 }
  0x82   : > { %v196_v53 = vpop.permute.xlu2 %195 }
  0x89   : > { %v330_v23 = vpop.permute.xlu1 %329  ;;  %v306_v24 = vpop.permute.xlu0 %305 }
  0x8a   : > { %v332_v25 = vsel %vm331_vm1, %v328_v15, %v330_v23  ;;  %v333_v26 = vsel %vm331_vm1, %v330_v23, %v328_v15  ;;  %v308_v27 = vsel %vm307_vm2, %v304_v16, %v306_v24  ;;  %v309_v28 = vsel %vm307_vm2, %v306_v24, %v304_v16 }
  0x8b   : > { %v341_v29 = vmul.f32 %v337_v19, %v332_v25  ;;  %v342_v30 = vmul.f32 %v338_v20, %v333_v26  ;;  %v317_v31 = vmul.f32 %v313_v21, %v308_v27  ;;  %v318_v32 = vmul.f32 %v314_v22, %v309_v28  ;;  %v175_v19 = vpop.permute.xlu2 %174 }
  0x8c   : > { %v185_v20 = vperm.slane %v183_v18, 0  ;;  %v186_v21 = vperm.slane %v183_v18, 1 }
  0x8d   : > { %343 = vst [vmem:[#allocation2 + $0x40] sm:$0xf] %v341_v29  ;;  %v321_v34 = vrot.slane %v317_v31, 4  ;;  %v322_v35 = vrot.slane %v318_v32, 4  ;;  %v408_v31 = vld [vmem:[%s563_s17] sm:$0xf0] }
  0x8e   : > { %344 = vst [vmem:[#allocation2 + $0x38] sm:$0xf] %v342_v30  ;;  %v409_v32 = vld [vmem:[%s563_s17 + $0x8] sm:$0xf0] }
  0x8f   : > { %325 = vst [vmem:[#allocation2 + $0x8] sm:$0xf0] %v321_v34  ;;  %v411_v34 = vld [vmem:[%s563_s17 + $0x18] sm:$0xff] }
  0x90   : > { %326 = vst [vmem:[#allocation2 + $0x20] sm:$0xf0] %v322_v35 }
  0x91   : > { %v288_v39 = vpop.permute.xlu1 %287  ;;  %v286_v40 = vpop.permute.xlu0 %285  ;;  %412 = vst [vmem:[%s170_s23] sm:$0xf0] %v408_v31 }
  0x92   : > { %v290_v41 = vsel %vm289_vm3, %v286_v40, %v288_v39  ;;  %v291_v42 = vsel %vm289_vm3, %v288_v39, %v286_v40  ;;  %413 = vst [vmem:[%s170_s23 + $0x8] sm:$0xf0] %v409_v32 }
  0x93   : > { %v299_v43 = vmul.f32 %v295_v37, %v290_v41  ;;  %v300_v44 = vmul.f32 %v296_v38, %v291_v42  ;;  %415 = vst [vmem:[%s170_s23 + $0x18] sm:$0xff] %v411_v34 }
  0x94   : > { %v353_v46 = vld [vmem:[#allocation2 + $0x40] sm:$0xf] }
  0x95   : > { %301 = vst [vmem:[#allocation2 + $0x8] sm:$0xf] %v299_v43  ;;  %487 = vmatpush.msk.msra.mxu0 %vm359_vm4, %v353_v46  ;;  %v354_v48 = vld [vmem:[#allocation2 + $0x38] sm:$0xf] }
  0x96   : > { %302 = vst [vmem:[#allocation2 + $0x20] sm:$0xf] %v300_v44  ;;  %489 = vmatpush.msk.msra.mxu1 %vm359_vm4, %v354_v48 }
  0x99   : > { %v194_v54 = vpop.permute.xlu1 %193  ;;  %v238_v55 = vpop.permute.xlu0 %237 }
  0x9a   : > { %v240_v56 = vsel %vm239_vm5, %v236_v36, %v238_v55  ;;  %v241_v57 = vsel %vm239_vm5, %v238_v55, %v236_v36  ;;  %v198_v58 = vsel %vm197_vm6, %v194_v54, %v196_v53  ;;  %v199_v59 = vsel %vm197_vm6, %v196_v53, %v194_v54 }
  0x9b   : > { %v249_v60 = vmul.f32 %v245_v49, %v241_v57  ;;  %v250_v61 = vmul.f32 %v246_v50, %v240_v56  ;;  %v207_v62 = vmul.f32 %v203_v51, %v199_v59  ;;  %v208_v63 = vmul.f32 %v204_v52, %v198_v58 }
  0x9c   : > { %v351_v0 = vld [vmem:[#allocation2 + $0x8] sm:$0xff] }
  0x9d   : > { %v253_v2 = vrot.slane %v249_v60, 4  ;;  %v254_v3 = vrot.slane %v250_v61, 4  ;;  %378 = vmatpush.msra.mxu0 %v351_v0  ;;  %v352_v5 = vld [vmem:[#allocation2 + $0x20] sm:$0xff]  ;;  %v211_v6 = vrot.slane %v207_v62, 4  ;;  %v212_v7 = vrot.slane %v208_v63, 4 }
  0x9e   : > { %398 = vmatpush.msra.mxu1 %v352_v5 }
  0x9f   : > { %257 = vst [vmem:[#allocation2 + $0x18] sm:$0xf0] %v253_v2  ;;  %379 = vmatpush.msra.mxu0 %v349_v8 }
  0xa0   : > { %258 = vst [vmem:[#allocation2 + $0x10] sm:$0xf0] %v254_v3  ;;  %399 = vmatpush.msra.mxu1 %v350_v9 }
  0xa1   : > { %215 = vst [vmem:[#allocation2 + $0x30] sm:$0xf0] %v211_v6  ;;  %v220_v12 = vpop.permute.xlu1 %219  ;;  %v218_v13 = vpop.permute.xlu0 %217 }
  0xa2   : > { %216 = vst [vmem:[#allocation2] sm:$0xf0] %v212_v7  ;;  %v222_v14 = vsel %vm221_vm7, %v218_v13, %v220_v12  ;;  %v223_v15 = vsel %vm221_vm7, %v220_v12, %v218_v13 }
  0xa3   : > { %v231_v16 = vmul.f32 %v227_v10, %v223_v15  ;;  %v232_v17 = vmul.f32 %v228_v11, %v222_v14 }
  0xa5   : > { %233 = vst [vmem:[#allocation2 + $0x18] sm:$0xf] %v231_v16 }
  0xa6   : > { %234 = vst [vmem:[#allocation2 + $0x10] sm:$0xf] %v232_v17 }
  0xa9   : > { %v177_v22 = vpop.permute.xlu0 %176 }
  0xaa   : > { %v181_v23 = vsel %vm180_vm8, %v175_v19, %v177_v22  ;;  %v182_v24 = vsel %vm180_vm8, %v177_v22, %v175_v19 }
  0xab   : > { %v189_v25 = vmul.f32 %v185_v20, %v182_v24  ;;  %v190_v26 = vmul.f32 %v186_v21, %v181_v23 }
  0xac   : > { %v347_v27 = vld [vmem:[#allocation2 + $0x18] sm:$0xff] }
  0xad   : > { %191 = vst [vmem:[#allocation2 + $0x30] sm:$0xf] %v189_v25  ;;  %380 = vmatpush.msra.mxu0 %v347_v27  ;;  %v348_v28 = vld [vmem:[#allocation2 + $0x10] sm:$0xff] }
  0xae   : > { %192 = vst [vmem:[#allocation2] sm:$0xf] %v190_v26  ;;  %400 = vmatpush.msra.mxu1 %v348_v28 }
  0xb4   : > { %v345_v29 = vld [vmem:[#allocation2 + $0x30] sm:$0xff] }
  0xb5   : > { %381 = vmatpush.msra.mxu0 %v345_v29  ;;  %v346_v30 = vld [vmem:[#allocation2] sm:$0xff] }
  0xb6   : > { %401 = vmatpush.msra.mxu1 %v346_v30  ;;  %488 = vmatmul.msk.f32.vlgmr.msra.gmra.mxu0 %vm355_vm9, %v171_v4 }
  0xb7   : > { %490 = vmatmul.msk.f32.vlgmr.msra.gmra.mxu1 %vm355_vm9, %v171_v4 }
 0x133   : > { %v383_v35 = vpop.f32.mrf.mxu0 }
 0x134   : > { %406 = vst [vmem:[%s170_s23] sm:$0xf] %v383_v35  ;;  %v403_v36 = vpop.f32.mrf.mxu1 }
 0x135   : > { %407 = vst [vmem:[%s170_s23 + $0x8] sm:$0xf] %v403_v36 }
 0x136 PF: > { %s13_s12 = sadd.s32 1, %s517_s12  }
 0x137   : > { %p10_p4 = scmp.ge.s32.totalorder %s13_s12, 4  }
 0x139   :  { %12 = sbr.rel (!%p10_p4) target bundleno = 1 (0x1), region = 69 }

</bundles_post_ra>
